<compile_context>
chip_gen: v7x
topology: tpu7x:2x2x1
jax: 0.10.0
libtpu: 0.0.40
codegen_flags: <defaults>
</compile_context>

<pallas_src>
import functools

import jax
import jax.numpy as jnp
from jax import lax
from jax.experimental import pallas as pl
from jax.experimental.pallas import tpu as pltpu


def dice_loss_kernel(x_ref, t_ref, out_ref, inter_acc, union_acc, *,
                     smooth, valid_s, need_mask):
    """One grid step = one (batch element, spatial tile).

    x_ref:     (C, St) logits tile (native dtype; channels on sublanes,
               spatial on lanes)
    t_ref:     (1, St) integer labels tile
    out_ref:   (1, 1) f32 per-batch dice sum (written on last spatial step)
    inter_acc: (C, 1) f32 scratch, running sum of p * onehot over spatial
    union_acc: (C, 1) f32 scratch, running sum of p + onehot over spatial
    """
    s = pl.program_id(1)
    num_s = pl.num_programs(1)

    @pl.when(s == 0)
    def _init():
        inter_acc[...] = jnp.zeros_like(inter_acc)
        union_acc[...] = jnp.zeros_like(union_acc)

    C, S_tile = x_ref.shape

    x = x_ref[...].astype(jnp.float32)                    # (C, St) f32
    t = t_ref[...].astype(jnp.int32)                      # (1, St) i32

    if need_mask:
        lane = lax.broadcasted_iota(jnp.int32, (1, S_tile), 1)
        valid = (s * S_tile + lane) < valid_s              # (1, St) bool
        maskf = valid.astype(jnp.float32)
        # Keep padded lanes finite before exp (garbage could be inf/NaN).
        x = jnp.where(valid, x, 0.0)
    else:
        valid = None
        maskf = None

    # Softmax over channels: sublane-axis reduce, exp + reciprocal on the EUP.
    m = jnp.max(x, axis=0, keepdims=True)                  # (1, St)
    e = jnp.exp(x - m)                                     # (C, St)
    denom = jnp.sum(e, axis=0, keepdims=True)              # (1, St)
    p = e * pl.reciprocal(denom, approx=False)             # (C, St)

    # One-hot targets built in-register: onehot[c, s] = (t[s] == c).
    ch = lax.broadcasted_iota(jnp.int32, (C, S_tile), 0)
    hit = t == ch                                          # (C, St) bool
    if need_mask:
        onehot = jnp.where(valid & hit, 1.0, 0.0)          # masked tail lanes
        p = p * maskf
    else:
        onehot = hit.astype(jnp.float32)

    # Lane-axis (XLU) partial reductions, accumulated across spatial tiles.
    inter_acc[...] += jnp.sum(p * onehot, axis=1, keepdims=True)       # (C, 1)
    union_acc[...] += (jnp.sum(p, axis=1, keepdims=True)
                       + jnp.sum(onehot, axis=1, keepdims=True))       # (C, 1)

    @pl.when(s == num_s - 1)
    def _finalize():
        dice = (2.0 * inter_acc[...] + smooth) / (union_acc[...] + smooth)
        out_ref[...] = jnp.sum(dice, axis=0, keepdims=True)            # (1, 1)


def simple_dice_loss(inputs, targets, smooth=1e-6):
    """inputs: (N, C, H, W) logits (f32 or bf16); targets: (N, H, W) int labels."""
    N, C, H, W = inputs.shape
    S = H * W

    # Free reshapes, no dtype changes (no extra HBM passes).
    x3 = inputs.reshape(N, C, S)
    t3 = targets.reshape(N, 1, S)

    # Spatial tile: aim for ~2 MiB of input bytes per grid step, lane dim a
    # multiple of 128 (or the full S when the image is small).
    bytes_per_col = C * x3.dtype.itemsize + t3.dtype.itemsize
    s_tile = max(128, ((2 * 1024 * 1024) // bytes_per_col) // 128 * 128)
    if s_tile >= S:
        s_tile = S
    num_s = pl.cdiv(S, s_tile)
    need_mask = (S % s_tile) != 0

    kernel = functools.partial(
        dice_loss_kernel, smooth=float(smooth), valid_s=S, need_mask=need_mask)

    dice_sums = pl.pallas_call(
        kernel,
        out_shape=jax.ShapeDtypeStruct((N, 1, 1), jnp.float32),
        grid_spec=pltpu.PrefetchScalarGridSpec(
            num_scalar_prefetch=0,
            grid=(N, num_s),
            in_specs=[
                # squeeze the batch dim; (C, s_tile) / (1, s_tile) blocks
                pl.BlockSpec((None, C, s_tile), lambda n, s: (n, 0, s)),
                pl.BlockSpec((None, 1, s_tile), lambda n, s: (n, 0, s)),
            ],
            out_specs=pl.BlockSpec((None, 1, 1), lambda n, s: (n, 0, 0)),
            scratch_shapes=[
                pltpu.VMEM((C, 1), jnp.float32),   # intersection partials
                pltpu.VMEM((C, 1), jnp.float32),   # union partials
            ],
        ),
        compiler_params=pltpu.CompilerParams(
            dimension_semantics=("parallel", "arbitrary"),
            vmem_limit_bytes=32 * 1024 * 1024,
        ),
    )(x3, t3)

    # Trivial wrapper-side finalize: loss = 1 - mean(dice) over (N, C).
    return 1.0 - jnp.sum(dice_sums) / (N * C)


def simple_dice_loss_reference(inputs, targets, smooth=1e-6):
    """Pure-JAX/XLA reference mirroring the PyTorch forward."""
    p = jax.nn.softmax(inputs.astype(jnp.float32), axis=1)           # (N,C,H,W)
    oh = jax.nn.one_hot(targets, inputs.shape[1], axis=1,
                        dtype=jnp.float32)                            # (N,C,H,W)
    inter = jnp.sum(p * oh, axis=(2, 3))                              # (N,C)
    union = jnp.sum(p, axis=(2, 3)) + jnp.sum(oh, axis=(2, 3))        # (N,C)
    dice = (2.0 * inter + smooth) / (union + smooth)
    return 1.0 - jnp.mean(dice)


if __name__ == "__main__":
    key = jax.random.PRNGKey(0)
    kx, kt = jax.random.split(key)

    N, C, H, W = 2, 4, 16, 16
    logits = jax.random.normal(kx, (N, C, H, W), jnp.float32)
    targets = jax.random.randint(kt, (N, H, W), 0, C, jnp.int32)

    loss = simple_dice_loss(logits, targets)
    jax.block_until_ready(loss)

    ref = simple_dice_loss_reference(logits, targets)
    assert loss.shape == (), "loss must be a scalar"
    assert jnp.allclose(loss, ref, atol=1e-5, rtol=1e-5), (
        f"mismatch vs reference: {loss} vs {ref}")

    print("KERNEL_OK")
</pallas_src>

<mosaic_0001>
module attributes {stable_mosaic.version = 11 : i64} {
  func.func @dice_loss_kernel(%arg0: i32, %arg1: i32, %arg2: memref<1x4x256xf32, #tpu.memory_space<vmem>>, %arg3: memref<1x1x256xi32, #tpu.memory_space<vmem>>, %arg4: memref<1x1x1xf32, #tpu.memory_space<vmem>>, %arg5: memref<4x1xf32, #tpu.memory_space<vmem>>, %arg6: memref<4x1xf32, #tpu.memory_space<vmem>>) attributes {dimension_semantics = [#tpu.dimension_semantics<parallel>, #tpu.dimension_semantics<arbitrary>], iteration_bounds = array<i64: 2, 1>, scalar_prefetch = 0 : i64, scratch_operands = 2 : i64, tpu.core_type = #tpu.core_type<tc>, window_params = [{transform_indices = @transform_0, window_bounds = array<i64: 1, 4, 256>}, {transform_indices = @transform_1, window_bounds = array<i64: 1, 1, 256>}, {transform_indices = @transform_2, window_bounds = array<i64: 1, 1, 1>}]} {
    %c0_i32 = arith.constant 0 : i32
    %0 = arith.cmpi eq, %arg1, %c0_i32 : i32
    %1 = arith.extui %0 : i1 to i32
    %c0_i32_0 = arith.constant 0 : i32
    %2 = arith.cmpi ne, %1, %c0_i32_0 : i32
    scf.if %2 {
      %cst_20 = arith.constant 0.000000e+00 : f32
      %39 = vector.broadcast %cst_20 : f32 to vector<4x1xf32>
      %c0_21 = arith.constant 0 : index
      %c0_22 = arith.constant 0 : index
      %40 = vector.load %arg5[%c0_21, %c0_22] : memref<4x1xf32, #tpu.memory_space<vmem>>, vector<4x1xf32>
      tpu.vector_store %arg5[%c0_21, %c0_22], %39 {strides = array<i32>} : memref<4x1xf32, #tpu.memory_space<vmem>>, vector<4x1xf32>,
      %cst_23 = arith.constant 0.000000e+00 : f32
      %41 = vector.broadcast %cst_23 : f32 to vector<4x1xf32>
      %c0_24 = arith.constant 0 : index
      %c0_25 = arith.constant 0 : index
      %42 = vector.load %arg6[%c0_24, %c0_25] : memref<4x1xf32, #tpu.memory_space<vmem>>, vector<4x1xf32>
      tpu.vector_store %arg6[%c0_24, %c0_25], %41 {strides = array<i32>} : memref<4x1xf32, #tpu.memory_space<vmem>>, vector<4x1xf32>,
    } else {
    }
    %c0 = arith.constant 0 : index
    %c0_1 = arith.constant 0 : index
    %c0_2 = arith.constant 0 : index
    %3 = vector.load %arg2[%c0, %c0_1, %c0_2] : memref<1x4x256xf32, #tpu.memory_space<vmem>>, vector<1x4x256xf32>
    %4 = vector.shape_cast %3 : vector<1x4x256xf32> to vector<4x256xf32>
    %c0_3 = arith.constant 0 : index
    %c0_4 = arith.constant 0 : index
    %c0_5 = arith.constant 0 : index
    %5 = vector.load %arg3[%c0_3, %c0_4, %c0_5] : memref<1x1x256xi32, #tpu.memory_space<vmem>>, vector<1x1x256xi32>
    %6 = vector.shape_cast %5 : vector<1x1x256xi32> to vector<1x256xi32>
    %cst = arith.constant dense<0xFF800000> : vector<256xf32>
    %7 = vector.multi_reduction <maximumf>, %4, %cst [0] : vector<4x256xf32> to vector<256xf32>
    %8 = vector.shape_cast %7 : vector<256xf32> to vector<1x256xf32>
    %9 = vector.broadcast %8 : vector<1x256xf32> to vector<4x256xf32>
    %10 = arith.subf %4, %9 : vector<4x256xf32>
    %11 = math.exp %10 : vector<4x256xf32>
    %cst_6 = arith.constant dense<0.000000e+00> : vector<256xf32>
    %12 = vector.multi_reduction <add>, %11, %cst_6 [0] : vector<4x256xf32> to vector<256xf32>
    %13 = vector.shape_cast %12 : vector<256xf32> to vector<1x256xf32>
    %14 = tpu.reciprocal %13 : vector<1x256xf32> -> vector<1x256xf32>
    %15 = vector.broadcast %14 : vector<1x256xf32> to vector<4x256xf32>
    %16 = arith.mulf %11, %15 : vector<4x256xf32>
    %17 = tpu.iota {dimensions = array<i32: 0>} : vector<4x256xi32>
    %18 = vector.broadcast %6 : vector<1x256xi32> to vector<4x256xi32>
    %19 = arith.cmpi eq, %18, %17 : vector<4x256xi32>
    %20 = arith.extui %19 : vector<4x256xi1> to vector<4x256xi32>
    %21 = arith.sitofp %20 : vector<4x256xi32> to vector<4x256xf32>
    %c0_7 = arith.constant 0 : index
    %c0_8 = arith.constant 0 : index
    %22 = vector.load %arg5[%c0_7, %c0_8] : memref<4x1xf32, #tpu.memory_space<vmem>>, vector<4x1xf32>
    %23 = arith.mulf %16, %21 : vector<4x256xf32>
    %cst_9 = arith.constant dense<0.000000e+00> : vector<4xf32>
    %24 = vector.multi_reduction <add>, %23, %cst_9 [1] : vector<4x256xf32> to vector<4xf32>
    %25 = vector.shape_cast %24 : vector<4xf32> to vector<4x1xf32>
    %26 = arith.addf %22, %25 : vector<4x1xf32>
    %c0_10 = arith.constant 0 : index
    %c0_11 = arith.constant 0 : index
    %27 = vector.load %arg5[%c0_10, %c0_11] : memref<4x1xf32, #tpu.memory_space<vmem>>, vector<4x1xf32>
    tpu.vector_store %arg5[%c0_10, %c0_11], %26 {strides = array<i32>} : memref<4x1xf32, #tpu.memory_space<vmem>>, vector<4x1xf32>,
    %c0_12 = arith.constant 0 : index
    %c0_13 = arith.constant 0 : index
    %28 = vector.load %arg6[%c0_12, %c0_13] : memref<4x1xf32, #tpu.memory_space<vmem>>, vector<4x1xf32>
    %cst_14 = arith.constant dense<0.000000e+00> : vector<4xf32>
    %29 = vector.multi_reduction <add>, %16, %cst_14 [1] : vector<4x256xf32> to vector<4xf32>
    %30 = vector.shape_cast %29 : vector<4xf32> to vector<4x1xf32>
    %cst_15 = arith.constant dense<0.000000e+00> : vector<4xf32>
    %31 = vector.multi_reduction <add>, %21, %cst_15 [1] : vector<4x256xf32> to vector<4xf32>
    %32 = vector.shape_cast %31 : vector<4xf32> to vector<4x1xf32>
    %33 = arith.addf %30, %32 : vector<4x1xf32>
    %34 = arith.addf %28, %33 : vector<4x1xf32>
    %c0_16 = arith.constant 0 : index
    %c0_17 = arith.constant 0 : index
    %35 = vector.load %arg6[%c0_16, %c0_17] : memref<4x1xf32, #tpu.memory_space<vmem>>, vector<4x1xf32>
    tpu.vector_store %arg6[%c0_16, %c0_17], %34 {strides = array<i32>} : memref<4x1xf32, #tpu.memory_space<vmem>>, vector<4x1xf32>,
    %c0_i32_18 = arith.constant 0 : i32
    %36 = arith.cmpi eq, %arg1, %c0_i32_18 : i32
    %37 = arith.extui %36 : i1 to i32
    %c0_i32_19 = arith.constant 0 : i32
    %38 = arith.cmpi ne, %37, %c0_i32_19 : i32
    scf.if %38 {
      %c0_20 = arith.constant 0 : index
      %c0_21 = arith.constant 0 : index
      %39 = vector.load %arg5[%c0_20, %c0_21] : memref<4x1xf32, #tpu.memory_space<vmem>>, vector<4x1xf32>
      %cst_22 = arith.constant 2.000000e+00 : f32
      %40 = vector.broadcast %cst_22 : f32 to vector<4x1xf32>
      %41 = arith.mulf %40, %39 : vector<4x1xf32>
      %cst_23 = arith.constant 9.99999997E-7 : f32
      %42 = vector.broadcast %cst_23 : f32 to vector<4x1xf32>
      %43 = arith.addf %41, %42 : vector<4x1xf32>
      %c0_24 = arith.constant 0 : index
      %c0_25 = arith.constant 0 : index
      %44 = vector.load %arg6[%c0_24, %c0_25] : memref<4x1xf32, #tpu.memory_space<vmem>>, vector<4x1xf32>
      %cst_26 = arith.constant 9.99999997E-7 : f32
      %45 = vector.broadcast %cst_26 : f32 to vector<4x1xf32>
      %46 = arith.addf %44, %45 : vector<4x1xf32>
      %47 = arith.divf %43, %46 : vector<4x1xf32>
      %cst_27 = arith.constant dense<0.000000e+00> : vector<1xf32>
      %48 = vector.multi_reduction <add>, %47, %cst_27 [0] : vector<4x1xf32> to vector<1xf32>
      %49 = vector.shape_cast %48 : vector<1xf32> to vector<1x1xf32>
      %c0_28 = arith.constant 0 : index
      %c0_29 = arith.constant 0 : index
      %c0_30 = arith.constant 0 : index
      %50 = vector.load %arg4[%c0_28, %c0_29, %c0_30] : memref<1x1x1xf32, #tpu.memory_space<vmem>>, vector<1x1x1xf32>
      %51 = vector.shape_cast %50 : vector<1x1x1xf32> to vector<1x1xf32>
      %52 = vector.shape_cast %49 : vector<1x1xf32> to vector<1x1x1xf32>
      tpu.vector_store %arg4[%c0_28, %c0_29, %c0_30], %52 {strides = array<i32>} : memref<1x1x1xf32, #tpu.memory_space<vmem>>, vector<1x1x1xf32>,
    } else {
    }
    return
  }
  func.func @transform_0(%arg0: i32, %arg1: i32) -> (i32, i32, i32) {
    %c0_i32 = arith.constant 0 : i32
    %c0_i32_0 = arith.constant 0 : i32
    return %arg0, %c0_i32, %arg1 : i32, i32, i32
  }
  func.func @transform_1(%arg0: i32, %arg1: i32) -> (i32, i32, i32) {
    %c0_i32 = arith.constant 0 : i32
    %c0_i32_0 = arith.constant 0 : i32
    return %arg0, %c0_i32, %arg1 : i32, i32, i32
  }
  func.func @transform_2(%arg0: i32, %arg1: i32) -> (i32, i32, i32) {
    %c0_i32 = arith.constant 0 : i32
    %c0_i32_0 = arith.constant 0 : i32
    %c0_i32_1 = arith.constant 0 : i32
    return %arg0, %c0_i32, %c0_i32_0 : i32, i32, i32
  }
}

</mosaic_0001>

<bundles_post_ra>
// kernel: tpu_custom_call.1
= control target key start
LH: loop header
LB: loop body
LE: loop exit
PB: predicated region body
PF: predicated region fallthrough
CT: control target
= control target key end

     0   :  { %7 = vsyncpa [#allocation5], 0  ;;  %s848_s0 = inlined_call_operand.hbm [shape: f32[2,4,256], index: 0, kind: input, shape index: {}]   ;;  %s849_s1 = inlined_call_operand.hbm [shape: s32[2,1,256], index: 1, kind: input, shape index: {}]   ;;  %s850_s2 = inlined_call_operand.vmem [shape: f32[2,1,1], index: 2, kind: output, shape index: {}]  }
   0x1   :  { %9 = vsyncpa [#allocation5 + $0x1], 0 }
   0x2   :  { %10 = vsyncpa [#allocation7], 0 }
   0x3   :  { %12 = vsyncpa [#allocation7 + $0x1], 0  ;;  %s664_s9 = smov 0   ;;  %s666_s10 = smov 0  }
   0x4   :  { %s668_s11 = smov 0   ;;  %s670_s12 = smov 0  }
   0x5   :  { %s672_s13 = smov 0   ;;  %s674_s14 = smov 0  }
   0x6 LB: > { %s441_s15 = sadd.s32 4294967295, %s644_s14   ;;  %s30_s16 = sadd.s32 1, %s640_s13  ;;  %s644_s14 = sphi %s674_s14, %s18_s14   ;;  %s640_s13 = sphi %s672_s13, %s864_s13   ;;  %s636_s12 = sphi %s670_s12, %s863_s12   ;;  %s632_s11 = sphi %s668_s11, %s862_s11   ;;  %s628_s10 = sphi %s666_s10, %s861_s10   ;;  %s624_s9 = sphi %s664_s9, %s860_s9  }
   0x7   : > { %p32_p0 = scmp.ge.s32.totalorder %s30_s16, 2  ;;  %s39_s17 = sadd.s32 1, %s632_s11 }
   0x8   : > { %p46_p1 = scmp.ne.s32.totalorder %s632_s11, %s628_s10  ;;  %p47_p2 = scmp.eq.s32.totalorder %s644_s14, 0 }
   0x9   : > { %s866_s16 = smov (%p32_p0, %s30_s16), 0  ;;  %p52_p4 = scmp.ne.s32.totalorder %s628_s10, %s624_s9 }
   0xa   : > { %p700_p3 = por %p47_p2, %p46_p1  ;;  %s34_s19 = ssub.s32 %s640_s13, %s866_s16 }
   0xb   : > { %p53_p5 = scmp.eq.s32.totalorder %s441_s15, 0  ;;  %p37_p6 = scmp.eq.s32.totalorder %s34_s19, 0 }
   0xc   : > { %p471_p8 = scmp.lt.s32.totalorder %s644_s14, 2  ;;  %s716_s22 = sand.u32 1, %s632_s11  }
   0xd   : > { %p707_p7 = por %p53_p5, %p52_p4  ;;  %s458_s23 = sshll.u32 %s640_s13, 7 }
   0xe   : > { %s713_s21 = scalar_select %p37_p6, %s632_s11, %s39_s17  }
   0xf   : > { %s853_s20 = scalar_select %p707_p7, 1, 0 }
  0x10   : > { %s445_s24 = sshll.u32 %s716_s22, 3  ;;  %s723_s27 = scalar_lea.hbm %s848_s0, %s458_s23 }
  0x11   : > { %s134_s28 = scalar_lea.vmem [#allocation4], %s445_s24  ;;  %p727_p9 = pnand %p471_p8, %p700_p3 }
  0x12   : > { %s144_s29 = sshll.u32 %s134_s28, 4  ;;  %s131_s3 = scalar_lea.sflag [#allocation5], %s716_s22  ;;  %s731_s29 = int_to_ptr.vmem [resolvable:$true] %s144_s29 }
  0x13   : > { %s530_s4 = scalar_lea.hbm %s723_s27, 128  ;;  %p532_p13 = pneg %p727_p9 }
  0x14   : > { %p531_p12 = scmp.ne.s32.totalorder %s723_s27, %s530_s4  ;;  %s535_s7 = scalar_lea.hbm %s848_s0, 256 }
  0x15   : > { %p536_p2 = scmp.lt.u32.totalorder %s723_s27, %s848_s0  ;;  %p537_p3 = scmp.lt.u32.totalorder %s535_s7, %s530_s4 }
  0x16   : > { %p533_p0 = pnand %p532_p13, %p531_p12  ;;  %p539_p5 = scmp.lt.u32.totalorder %s530_s4, %s723_s27 }
  0x17   : > { %p538_p4 = por %p537_p3, %p536_p2 }
  0x18   : > { %p534_p1 = pneg %p533_p0 }
  0x19   : > { %p540_p6 = por %p539_p5, %p538_p4 }
  0x1b   : > { %p541_p8 = pnand %p540_p6, %p534_p1 }
  0x1d   : > { %544 = shalt.err (!%p541_p8)
}
  0x1e   : > { %s545_s15 = scalar_lea.vmem %s731_s29, 128  ;;  %s646_s17 = smov [#allocation4]  }
  0x1f   : > { %p546_p12 = scmp.ne.s32.totalorder %s731_s29, %s545_s15  ;;  %s550_s18 = sshll.u32 %s646_s17, 4  ;;  %s551_s18 = int_to_ptr.vmem [resolvable:$false] %s550_s18 }
  0x20   : > { %s552_s19 = scalar_lea.vmem %s551_s18, 256  ;;  %p553_p11 = scmp.lt.s32.totalorder %s731_s29, %s551_s18 }
  0x21   : > { %p548_p0 = pnand %p546_p12, %p532_p13  ;;  %p554_p2 = scmp.lt.s32.totalorder %s552_s19, %s545_s15 }
  0x23   : > { %p549_p10 = pneg %p548_p0  ;;  %p555_p3 = por %p554_p2, %p553_p11 }
  0x25   : > { %p556_p4 = pnand %p555_p3, %p549_p10 }
  0x27   : > { %559 = shalt.err (!%p556_p4)
}
  0x28   : > { %467 = dma.hbm_to_vmem [thread:$0]  (!%p727_p9), %s723_s27, 128, %s731_s29, %s131_s3  }
  0x29   : > { %p855_p1 = scmp.lt.s32.totalorder %s644_s14, 3  ;;  %p856_p5 = scmp.ge.s32.totalorder %s644_s14, 1 }
  0x2a   : > { %s448_s24 = sshll.u32 %s716_s22, 1  ;;  %s459_s25 = sshll.u32 %s640_s13, 5 }
  0x2b   : > { %p765_p6 = pnand %p856_p5, %p855_p1  ;;  %s774_s4 = scalar_lea.hbm %s849_s1, %s459_s25 }
  0x2c   : > { %s155_s5 = scalar_lea.vmem [#allocation6], %s448_s24  ;;  %s152_s27 = scalar_lea.sflag [#allocation7], %s716_s22 }
  0x2d   : > { %s857_s23 = scalar_select %p765_p6, 1, 0 }
  0x2e   : > { %s165_s6 = sshll.u32 %s155_s5, 4  ;;  %s560_s29 = scalar_lea.hbm %s774_s4, 32  ;;  %s166_s6 = int_to_ptr.vmem [resolvable:$true] %s165_s6 }
  0x2f   : > { %p561_p10 = scmp.ne.s32.totalorder %s774_s4, %s560_s29  ;;  %s565_s8 = scalar_lea.hbm %s849_s1, 64 }
  0x30   : > { %p566_p12 = scmp.lt.u32.totalorder %s774_s4, %s849_s1  ;;  %p567_p0 = scmp.lt.u32.totalorder %s565_s8, %s560_s29 }
  0x31   : > { %p563_p11 = pnand %p561_p10, %p532_p13  ;;  %p569_p3 = scmp.lt.u32.totalorder %s560_s29, %s774_s4 }
  0x32   : > { %p568_p2 = por %p567_p0, %p566_p12 }
  0x33   : > { %p564_p8 = pneg %p563_p11 }
  0x34   : > { %p570_p4 = por %p569_p3, %p568_p2 }
  0x36   : > { %p571_p1 = pnand %p570_p4, %p564_p8 }
  0x38   : > { %574 = shalt.err (!%p571_p1)
}
  0x39   : > { %s575_s22 = scalar_lea.vmem %s166_s6, 32  ;;  %s647_s17 = smov [#allocation6]  }
  0x3a   : > { %p576_p5 = scmp.ne.s32.totalorder %s166_s6, %s575_s22  ;;  %s580_s18 = sshll.u32 %s647_s17, 4  ;;  %s581_s18 = int_to_ptr.vmem [resolvable:$false] %s580_s18 }
  0x3b   : > { %s582_s19 = scalar_lea.vmem %s581_s18, 64  ;;  %p583_p7 = scmp.lt.s32.totalorder %s166_s6, %s581_s18 }
  0x3c   : > { %p578_p10 = pnand %p576_p5, %p532_p13  ;;  %p584_p6 = scmp.lt.s32.totalorder %s582_s19, %s575_s22 }
  0x3e   : > { %p579_p11 = pneg %p578_p10  ;;  %p585_p0 = por %p584_p6, %p583_p7 }
  0x40   : > { %p586_p12 = pnand %p585_p0, %p579_p11 }
  0x42   : > { %589 = shalt.err (!%p586_p12)
}
  0x43   : > { %470 = dma.hbm_to_vmem [thread:$0]  (!%p727_p9), %s774_s4, 32, %s166_s6, %s152_s27  }
  0x44   : > { %p858_p8 = scmp.ne.s32.totalorder %s857_s23, 0 }
  0x45   : > { %s176_s24 = sand.u32 (!%p858_p8), 1, %s628_s10   ;;  %p859_p13 = scmp.ne.s32.totalorder (!%p858_p8), %s853_s20, 0 }
  0x46   : > { %174 = sbr.rel (%p858_p8) target bundleno = 336 (0x150), region = 28  ;;  %s452_s25 = sshll.u32 (!%p858_p8), %s176_s24, 3 }
  0x47   : > { %s177_s26 = scalar_lea.sflag (!%p858_p8), [#allocation5], %s176_s24  ;;  %s180_s28 = scalar_lea.vmem (!%p858_p8), [#allocation4], %s452_s25 }
  0x4d   : > { %615 = dma.done.wait (%p859_p13), %s177_s26, 128  }
  0x4e   : > { %617 = vsyncadd (%p859_p13), %s177_s26, 4294967168  ;;  %s453_s5 = sshll.u32 %s176_s24, 1  ;;  %s186_s29 = scalar_lea.sflag [#allocation7], %s176_s24 }
  0x4f   : > { %s803_s30 = scalar_lea.vmem [#allocation6], %s453_s5 }
  0x50   : > { %619 = dma.done.wait (%p859_p13), %s186_s29, 32  }
  0x51   : > { %621 = vsyncadd (%p859_p13), %s186_s29, 4294967264  ;;  %vm222_vm0 = vcmask 3072   ;;  %v648_v0 = vmov 0.0   ;;  %vm230_vm1 = vcmask 1043456   ;;  %v225_v1 = vld [vmem:[%s180_s28] sm:$0xff]  ;;  %v276_v29 = vlaneseq  ;;  %p215_p7 = scmp.lt.s32.totalorder %s636_s12, 1 }
  0x52   : > { %223 = vst.msk [vmem:[#allocation2] sm:$0xf] %vm222_vm0, %v648_v0  ;;  %224 = vst.msk [vmem:[#allocation3] sm:$0xf] %vm222_vm0, %v648_v0  ;;  %v228_v2 = vcombine.high %v225_v1, %v225_v1  ;;  %v231_v3 = vsel %vm230_vm1, %v225_v1, -inf  ;;  %vm343_vm4 = vcmask 0  }
  0x53   : > { %v232_v4 = vrot.slane %v231_v3, 4  ;;  %v277_v34 = vshrl.u32 %v276_v29, 7  ;;  %v226_v40 = vld [vmem:[%s803_s30] sm:$0x3]  ;;  %s868_s12 = smov (!%p215_p7, %s636_s12), 1 }
  0x54   : > { %v238_v5 = vsel %vm230_vm1, %v228_v2, -inf  ;;  %s217_s4 = scalar_lea.vmem %s850_s2, %s868_s12 }
  0x55   : > { %v233_v6 = vmax.f32 %v231_v3, %v232_v4  ;;  %v239_v7 = vrot.slane %v238_v5, 4  ;;  %v280_v38 = vsub.s32 0, %v277_v34  ;;  %v284_v39 = vsub.s32 1, %v277_v34 }
  0x57   : > { %v234_v8 = vrot.slane %v233_v6, 2  ;;  %v240_v9 = vmax.f32 %v238_v5, %v239_v7  ;;  %v281_v41 = vrot.slane %v226_v40, %v280_v38  ;;  %v285_v42 = vrot.slane %v226_v40, %v284_v39 }
  0x59   : > { %v235_v10 = vmax.f32 %v233_v6, %v234_v8  ;;  %v241_v11 = vrot.slane %v240_v9, 2  ;;  %vm286_vm2 = vcmp.eq.s32.totalorder %v281_v41, %v277_v34  ;;  %vm287_vm3 = vcmp.eq.s32.totalorder %v285_v42, %v277_v34  ;;  %v292_v63 = vld [vmem:[#allocation2] sm:$0xf]  ;;  %v309_v3 = vld [vmem:[#allocation3] sm:$0xf] }
  0x5a   : > { %v454_v45 = vsel %vm286_vm2, 1.0, %v648_v0  ;;  %v455_v46 = vsel %vm287_vm3, 1.0, %v648_v0 }
  0x5b   : > { %v236_v12 = vrot.slane %v235_v10, 1  ;;  %v242_v13 = vmax.f32 %v240_v9, %v241_v11  ;;  %v295_v48 = vcombine.low %v454_v45, %v455_v46  ;;  %v318_v53 = vsel %vm230_vm1, %v454_v45, 0.0 }
  0x5c   : > { %v319_v55 = vsel %vm230_vm1, %v455_v46, 0.0 }
  0x5d   : > { %v237_v14 = vmax.f32 %v235_v10, %v236_v12  ;;  %v243_v15 = vrot.slane %v242_v13, 1  ;;  %v320_v60 = vadd.f32 %v319_v55, %v318_v53 }
  0x5f   : > { %v244_v16 = vmax.f32 %v242_v13, %v243_v15 }
  0x61   : > { %v247_v17 = vcombine.low %v237_v14, %v244_v16 }
  0x63   : > { %v249_v18 = vsub.f32 %v225_v1, %v247_v17 }
  0x65   : > { %v250_v19 = vmul.f32 1.442695, %v249_v18 }
  0x67   : > { %522 = vpow2.f32 %v250_v19 }
  0x71   : > { %v523_v20 = vpop.eup %522 }
  0x72   : > { %v253_v21 = vcombine.high %v523_v20, %v523_v20  ;;  %v255_v22 = vsel %vm230_vm1, %v523_v20, 0.0 }
  0x73   : > { %v256_v23 = vrot.slane %v255_v22, 4 }
  0x74   : > { %v262_v24 = vsel %vm230_vm1, %v253_v21, 0.0 }
  0x75   : > { %v257_v25 = vadd.f32 %v256_v23, %v255_v22  ;;  %v263_v26 = vrot.slane %v262_v24, 4 }
  0x77   : > { %v258_v27 = vrot.slane %v257_v25, 2  ;;  %v264_v28 = vadd.f32 %v263_v26, %v262_v24 }
  0x79   : > { %v259_v30 = vadd.f32 %v258_v27, %v257_v25  ;;  %v265_v31 = vrot.slane %v264_v28, 2 }
  0x7b   : > { %v260_v32 = vrot.slane %v259_v30, 1  ;;  %v266_v33 = vadd.f32 %v265_v31, %v264_v28 }
  0x7d   : > { %v261_v35 = vadd.f32 %v260_v32, %v259_v30  ;;  %v267_v36 = vrot.slane %v266_v33, 1 }
  0x7f   : > { %v268_v37 = vadd.f32 %v267_v36, %v266_v33  ;;  %524 = vrcp.f32 %v261_v35 }
  0x81   : > { %526 = vrcp.f32 %v268_v37 }
  0x89   : > { %v525_v43 = vpop.eup %524 }
  0x8b   : > { %v527_v44 = vpop.eup %526 }
  0x8c   : > { %v273_v47 = vcombine.low %v525_v43, %v527_v44 }
  0x8e   : > { %v275_v49 = vmul.f32 %v523_v20, %v273_v47 }
  0x90   : > { %v311_v50 = vcombine.high %v275_v49, %v275_v49  ;;  %v313_v51 = vsel %vm230_vm1, %v275_v49, 0.0  ;;  %v297_v52 = vmul.f32 %v295_v48, %v275_v49 }
  0x92   : > { %v314_v54 = vsel %vm230_vm1, %v311_v50, 0.0  ;;  %v299_v56 = vcombine.high %v297_v52, %v297_v52  ;;  %v301_v57 = vsel %vm230_vm1, %v297_v52, 0.0 }
  0x93   : > { %v315_v58 = vadd.f32 %v314_v54, %v313_v51 }
  0x94   : > { %v302_v59 = vsel %vm230_vm1, %v299_v56, 0.0 }
  0x95   : > { %316 = vadd.xlane.f32.xlu0 %v315_v58  ;;  %v303_v61 = vadd.f32 %v302_v59, %v301_v57 }
  0x97   : > { %304 = vadd.xlane.f32.xlu1 %v303_v61 }
  0x99   : > { %321 = vadd.xlane.f32.xlu0 %v320_v60 }
 0x122   : > { %v317_v62 = vpop.xlane.xlu0 %316 }
 0x124   : > { %v305_v0 = vpop.xlane.xlu1 %304 }
 0x125   : > { %v306_v1 = vadd.f32 %v305_v0, %v292_v63 }
 0x126   : > { %v322_v2 = vpop.xlane.xlu0 %321 }
 0x127   : > { %v323_v4 = vadd.f32 %v322_v2, %v317_v62  ;;  %308 = vst.msk [vmem:[#allocation2] sm:$0xf] %vm222_vm0, %v306_v1 }
 0x129   : > { %v324_v5 = vadd.f32 %v323_v4, %v309_v3 }
 0x12b   : > { %325 = vst.msk [vmem:[#allocation3] sm:$0xf] %vm222_vm0, %v324_v5 }
 0x12e   : > { %v329_v8 = vld [vmem:[#allocation2] sm:$0xf] }
 0x12f   : > { %v330_v9 = vmul.f32 2.0, %v329_v8 }
 0x131   : > { %v331_v10 = vadd.f32 1e-06, %v330_v9 }
 0x132   : > { %v332_v6 = vld [vmem:[#allocation3] sm:$0xf] }
 0x133   : > { %v333_v7 = vadd.f32 1e-06, %v332_v6 }
 0x135   : > { %528 = vrcp.f32 %v333_v7 }
 0x13f   : > { %v529_v11 = vpop.eup %528 }
 0x140   : > { %v335_v12 = vmul.f32 %v529_v11, %v331_v10 }
 0x142   : > { %v336_v13 = vsel %vm222_vm0, %v335_v12, 0.0 }
 0x143   : > { %v337_v14 = vrot.slane %v336_v13, 4 }
 0x145   : > { %v338_v15 = vadd.f32 %v337_v14, %v336_v13 }
 0x147   : > { %v339_v16 = vrot.slane %v338_v15, 2 }
 0x149   : > { %v340_v17 = vadd.f32 %v339_v16, %v338_v15 }
 0x14b   : > { %v341_v18 = vrot.slane %v340_v17, 1 }
 0x14d   : > { %v342_v19 = vadd.f32 %v341_v18, %v340_v17 }
 0x14f   : > { %344 = vst.msk [vmem:[%s217_s4] sm:$0x1] %vm343_vm4, %v342_v19 }
 0x150 PF: > { %s18_s14 = sadd.s32 1, %s644_s14   ;;  %s860_s9 = smov %s628_s10 }
 0x151   : > { %p15_p9 = scmp.ge.s32.totalorder %s18_s14, 4   ;;  %s861_s10 = smov %s632_s11 }
 0x152   : > { %s862_s11 = smov %s713_s21  ;;  %s863_s12 = smov %s640_s13 }
 0x153   : > { %s864_s13 = smov %s866_s16  ;;  %17 = sbr.rel (!%p15_p9) target bundleno = 6 (0x6), region = 89 }
 0x15a   :  { %362 = vsyncpa [#allocation5], 1 }
 0x15b   :  { %364 = vsyncpa [#allocation5 + $0x1], 1 }
 0x15c   :  { %365 = vsyncpa [#allocation7], 1 }
 0x15d   :  { %367 = vsyncpa [#allocation7 + $0x1], 1 }

</bundles_post_ra>
